<compile_context>
chip_gen: v5e
topology: v5e:2x2
jax: 0.10.0
libtpu: 0.0.40
codegen_flags: <defaults>
</compile_context>

<pallas_src>
import jax
import jax.numpy as jnp
from jax.experimental import pallas as pl
from jax.experimental.pallas import tpu as pltpu

IN_DIM = 28 * 28   # 784
HID_DIM = 64
OUT_DIM = 3

# Lane-aligned padded dims used for the weights inside the kernel.
HID_PAD = 128
OUT_PAD = 128


def _round_up(n, m):
    return ((n + m - 1) // m) * m


def _cdiv(a, b):
    return (a + b - 1) // b


def encoder_kernel(x_ref, w1_ref, b1_ref, w2_ref, b2_ref, o_ref):
    # Fused MLP hot path, one batch tile per grid step; weights stay resident.
    x = x_ref[...].astype(jnp.bfloat16)                                 # (tb, 784) bf16 (cheap VPU cast)
    h = jnp.dot(x, w1_ref[...], preferred_element_type=jnp.float32)     # (tb, 128) f32 acc on MXU
    h = jnp.maximum(h + b1_ref[...], 0.0)                               # f32 bias + ReLU
    y = jnp.dot(h, w2_ref[...], preferred_element_type=jnp.float32)     # (tb, 128)
    y = y + b2_ref[...]
    o_ref[...] = y[:, :OUT_DIM].astype(o_ref.dtype)                     # narrow (tb, 3) store


def pack_params(w1, b1, w2, b2):
    """Pad weights to lane-aligned shapes (done once); w1 -> bf16 for the big dot."""
    w1p = jnp.pad(w1, ((0, 0), (0, HID_PAD - HID_DIM))).astype(jnp.bfloat16)   # (784, 128)
    b1p = jnp.pad(b1, ((0, 0), (0, HID_PAD - HID_DIM))).astype(jnp.float32)    # (1, 128)
    w2p = jnp.pad(w2, ((0, HID_PAD - HID_DIM), (0, OUT_PAD - OUT_DIM))).astype(jnp.float32)  # (128, 128)
    b2p = jnp.pad(b2, ((0, 0), (0, OUT_PAD - OUT_DIM))).astype(jnp.float32)    # (1, 128)
    return w1p, b1p, w2p, b2p


def encoder_forward(x, packed_params, *, block_b=512):
    w1p, b1p, w2p, b2p = packed_params
    B = x.shape[0]

    # Batch tile: multiple of 8 sublanes, capped at block_b, and split so there
    # are >=2 tiles whenever possible (v7x has 2 TensorCores; harmless elsewhere).
    tb = max(8, min(block_b, _round_up(_cdiv(B, 2), 8)))
    grid = (_cdiv(B, tb),)   # partial last tile handled by Pallas (masked stores)

    cost = pl.CostEstimate(
        flops=2 * B * (IN_DIM * HID_DIM + HID_DIM * OUT_DIM),
        transcendentals=0,
        bytes_accessed=(B * IN_DIM * x.dtype.itemsize
                        + B * OUT_DIM * 4
                        + IN_DIM * HID_PAD * 2 + HID_PAD * OUT_PAD * 4
                        + HID_PAD * 4 + OUT_PAD * 4),
    )

    out = pl.pallas_call(
        encoder_kernel,
        out_shape=jax.ShapeDtypeStruct((B, OUT_DIM), jnp.float32),
        grid=grid,
        in_specs=[
            pl.BlockSpec((tb, IN_DIM), lambda i: (i, 0)),         # x: streamed per batch tile (unpadded)
            pl.BlockSpec((IN_DIM, HID_PAD), lambda i: (0, 0)),    # w1: resident
            pl.BlockSpec((1, HID_PAD), lambda i: (0, 0)),         # b1: resident
            pl.BlockSpec((HID_PAD, OUT_PAD), lambda i: (0, 0)),   # w2: resident
            pl.BlockSpec((1, OUT_PAD), lambda i: (0, 0)),         # b2: resident
        ],
        out_specs=pl.BlockSpec((tb, OUT_DIM), lambda i: (i, 0)),  # narrow, full-last-dim output block
        compiler_params=pltpu.CompilerParams(
            dimension_semantics=("parallel",),
        ),
        cost_estimate=cost,
    )(x, w1p, b1p, w2p, b2p)

    return out


def init_params(key):
    # Deterministic init mimicking PyTorch nn.Linear: U(-1/sqrt(fan_in), +1/sqrt(fan_in)).
    k1, k2, k3, k4 = jax.random.split(key, 4)
    bound1 = 1.0 / (IN_DIM ** 0.5)
    bound2 = 1.0 / (HID_DIM ** 0.5)
    w1 = jax.random.uniform(k1, (IN_DIM, HID_DIM), jnp.float32, -bound1, bound1)
    b1 = jax.random.uniform(k2, (1, HID_DIM), jnp.float32, -bound1, bound1)
    w2 = jax.random.uniform(k3, (HID_DIM, OUT_DIM), jnp.float32, -bound2, bound2)
    b2 = jax.random.uniform(k4, (1, OUT_DIM), jnp.float32, -bound2, bound2)
    return w1, b1, w2, b2


def reference_forward(x, w1, b1, w2, b2):
    h = jnp.maximum(x @ w1 + b1, 0.0)
    return h @ w2 + b2


if __name__ == "__main__":
    key = jax.random.PRNGKey(0)
    kx, kp = jax.random.split(key)

    B = 8  # small batch
    x = jax.random.normal(kx, (B, IN_DIM), dtype=jnp.float32)
    w1, b1, w2, b2 = init_params(kp)

    packed = pack_params(w1, b1, w2, b2)
    out = encoder_forward(x, packed)
    out = jax.block_until_ready(out)

    assert out.shape == (B, OUT_DIM)

    # Loose check vs. the full-f32 reference (kernel uses bf16 x/w1 with f32 accumulation).
    ref_f32 = reference_forward(x, w1, b1, w2, b2)
    assert jnp.allclose(out, ref_f32, atol=5e-2, rtol=5e-2)

    # Tighter check vs. a bf16-quantized reference matching the kernel's precision.
    xq = x.astype(jnp.bfloat16).astype(jnp.float32)
    w1q = w1.astype(jnp.bfloat16).astype(jnp.float32)
    ref_q = reference_forward(xq, w1q, b1, w2, b2)
    assert jnp.allclose(out, ref_q, atol=1e-2, rtol=1e-2)

    print("KERNEL_OK")
</pallas_src>

<mosaic_0001>
module attributes {stable_mosaic.version = 11 : i64} {
  func.func @encoder_kernel(%arg0: i32, %arg1: memref<8x784xf32, #tpu.memory_space<vmem>>, %arg2: memref<784x128xbf16, #tpu.memory_space<vmem>>, %arg3: memref<1x128xf32, #tpu.memory_space<vmem>>, %arg4: memref<128x128xf32, #tpu.memory_space<vmem>>, %arg5: memref<1x128xf32, #tpu.memory_space<vmem>>, %arg6: memref<8x3xf32, #tpu.memory_space<vmem>>) attributes {dimension_semantics = [#tpu.dimension_semantics<parallel>], iteration_bounds = array<i64: 1>, scalar_prefetch = 0 : i64, scratch_operands = 0 : i64, tpu.core_type = #tpu.core_type<tc>, window_params = [{transform_indices = @transform_0, window_bounds = array<i64: 8, 784>}, {pipeline_mode = #tpu.pipeline_mode<synchronous>, transform_indices = @transform_1, window_bounds = array<i64: 784, 128>}, {pipeline_mode = #tpu.pipeline_mode<synchronous>, transform_indices = @transform_2, window_bounds = array<i64: 1, 128>}, {pipeline_mode = #tpu.pipeline_mode<synchronous>, transform_indices = @transform_3, window_bounds = array<i64: 128, 128>}, {pipeline_mode = #tpu.pipeline_mode<synchronous>, transform_indices = @transform_4, window_bounds = array<i64: 1, 128>}, {transform_indices = @transform_5, window_bounds = array<i64: 8, 3>}]} {
    %c0 = arith.constant 0 : index
    %c0_0 = arith.constant 0 : index
    %0 = vector.load %arg1[%c0, %c0_0] : memref<8x784xf32, #tpu.memory_space<vmem>>, vector<8x784xf32>
    %1 = arith.truncf %0 : vector<8x784xf32> to vector<8x784xbf16>
    %c0_1 = arith.constant 0 : index
    %c0_2 = arith.constant 0 : index
    %2 = vector.load %arg2[%c0_1, %c0_2] : memref<784x128xbf16, #tpu.memory_space<vmem>>, vector<784x128xbf16>
    %cst = arith.constant dense<0.000000e+00> : vector<8x128xf32>
    %3 = tpu.matmul %1, %2, %cst {dimension_numbers = #tpu.dot_dimension_numbers<[1], [0], [0], [1], [0, 0, 1, 1], [], []>} : vector<8x784xbf16>, vector<784x128xbf16>, vector<8x128xf32> -> vector<8x128xf32>
    %c0_3 = arith.constant 0 : index
    %c0_4 = arith.constant 0 : index
    %4 = vector.load %arg3[%c0_3, %c0_4] : memref<1x128xf32, #tpu.memory_space<vmem>>, vector<1x128xf32>
    %5 = vector.broadcast %4 : vector<1x128xf32> to vector<8x128xf32>
    %6 = arith.addf %3, %5 : vector<8x128xf32>
    %cst_5 = arith.constant 0.000000e+00 : f32
    %7 = vector.broadcast %cst_5 : f32 to vector<8x128xf32>
    %8 = arith.maximumf %6, %7 : vector<8x128xf32>
    %c0_6 = arith.constant 0 : index
    %c0_7 = arith.constant 0 : index
    %9 = vector.load %arg4[%c0_6, %c0_7] : memref<128x128xf32, #tpu.memory_space<vmem>>, vector<128x128xf32>
    %cst_8 = arith.constant dense<0.000000e+00> : vector<8x128xf32>
    %10 = tpu.matmul %8, %9, %cst_8 {dimension_numbers = #tpu.dot_dimension_numbers<[1], [0], [0], [1], [0, 0, 1, 1], [], []>} : vector<8x128xf32>, vector<128x128xf32>, vector<8x128xf32> -> vector<8x128xf32>
    %c0_9 = arith.constant 0 : index
    %c0_10 = arith.constant 0 : index
    %11 = vector.load %arg5[%c0_9, %c0_10] : memref<1x128xf32, #tpu.memory_space<vmem>>, vector<1x128xf32>
    %12 = vector.broadcast %11 : vector<1x128xf32> to vector<8x128xf32>
    %13 = arith.addf %10, %12 : vector<8x128xf32>
    %14 = vector.extract_strided_slice %13 {offsets = [0, 0], sizes = [8, 3], strides = [1, 1]} : vector<8x128xf32> to vector<8x3xf32>
    %c0_11 = arith.constant 0 : index
    %c0_12 = arith.constant 0 : index
    %15 = vector.load %arg6[%c0_11, %c0_12] : memref<8x3xf32, #tpu.memory_space<vmem>>, vector<8x3xf32>
    tpu.vector_store %arg6[%c0_11, %c0_12], %14 {strides = array<i32>} : memref<8x3xf32, #tpu.memory_space<vmem>>, vector<8x3xf32>,
    return
  }
  func.func @transform_0(%arg0: i32) -> (i32, i32) {
    %c0_i32 = arith.constant 0 : i32
    %c0_i32_0 = arith.constant 0 : i32
    return %arg0, %c0_i32 : i32, i32
  }
  func.func @transform_1(%arg0: i32) -> (i32, i32) {
    %c0_i32 = arith.constant 0 : i32
    %c0_i32_0 = arith.constant 0 : i32
    %c0_i32_1 = arith.constant 0 : i32
    return %c0_i32, %c0_i32_0 : i32, i32
  }
  func.func @transform_2(%arg0: i32) -> (i32, i32) {
    %c0_i32 = arith.constant 0 : i32
    %c0_i32_0 = arith.constant 0 : i32
    %c0_i32_1 = arith.constant 0 : i32
    return %c0_i32, %c0_i32_0 : i32, i32
  }
  func.func @transform_3(%arg0: i32) -> (i32, i32) {
    %c0_i32 = arith.constant 0 : i32
    %c0_i32_0 = arith.constant 0 : i32
    %c0_i32_1 = arith.constant 0 : i32
    return %c0_i32, %c0_i32_0 : i32, i32
  }
  func.func @transform_4(%arg0: i32) -> (i32, i32) {
    %c0_i32 = arith.constant 0 : i32
    %c0_i32_0 = arith.constant 0 : i32
    %c0_i32_1 = arith.constant 0 : i32
    return %c0_i32, %c0_i32_0 : i32, i32
  }
  func.func @transform_5(%arg0: i32) -> (i32, i32) {
    %c0_i32 = arith.constant 0 : i32
    %c0_i32_0 = arith.constant 0 : i32
    return %arg0, %c0_i32 : i32, i32
  }
}

</mosaic_0001>

<bundles_post_ra>
// kernel: tpu_custom_call.1
= control target key start
LH: loop header
LB: loop body
LE: loop exit
PB: predicated region body
PF: predicated region fallthrough
CT: control target
= control target key end

     0   :  { %10 = vsyncpa [#allocation3], 0  ;;  %s1006_s0 = inlined_call_operand.hbm [shape: f32[8,784], index: 0, kind: input, shape index: {}]   ;;  %s1007_s1 = inlined_call_operand.hbm [shape: bf16[784,128], index: 1, kind: input, shape index: {}]   ;;  %s1008_s2 = inlined_call_operand.vmem [shape: f32[1,128], index: 2, kind: input, shape index: {}]   ;;  %s1009_s3 = inlined_call_operand.hbm [shape: f32[128,128], index: 3, kind: input, shape index: {}]   ;;  %s1010_s4 = inlined_call_operand.vmem [shape: f32[1,128], index: 4, kind: input, shape index: {}]   ;;  %s1011_s5 = inlined_call_operand.vmem [shape: f32[8,3], index: 5, kind: output, shape index: {}]  }
   0x1   :  { %11 = vsyncpa [#allocation5], 0  ;;  %s27_s20 = sshll.u32 %s1007_s1, 4  ;;  %s951_s21 = smov [#allocation4]   ;;  %s28_s20 = int_to_ptr.hbm [resolvable:$true] %s27_s20 }
   0x2   :  { %s29_s22 = sshll.u32 %s951_s21, 4  ;;  %s17_s25 = sshll.u32 %s1006_s0, 4  ;;  %s30_s22 = int_to_ptr.vmem [resolvable:$true] %s29_s22  ;;  %s18_s25 = int_to_ptr.hbm [resolvable:$true] %s17_s25 }
   0x3   :  { %s952_s26 = smov 64   ;;  %s953_s27 = smov 4  }
   0x4   :  { %35 = dma.hbm_to_vmem [thread:$0]  %s28_s20, 6272, %s30_s22, [#allocation5], %s952_s26, %s952_s26, %s953_s27  }
   0x5   :  { %s954_s28 = smov [#allocation2]   ;;  %s42_s7 = sshll.u32 %s1009_s3, 4  ;;  %s43_s7 = int_to_ptr.hbm [resolvable:$true] %s42_s7 }
   0x6   :  { %s19_s29 = sshll.u32 %s954_s28, 4  ;;  %s955_s1 = smov [#allocation6]   ;;  %s20_s29 = int_to_ptr.vmem [resolvable:$true] %s19_s29 }
   0x7   :  { %22 = dma.hbm_to_vmem [thread:$0]  %s18_s25, 896, %s20_s29, [#allocation3]  }
   0x8   :  { %s44_s8 = sshll.u32 %s955_s1, 4  ;;  %s956_s9 = smov 128   ;;  %s45_s8 = int_to_ptr.vmem [resolvable:$true] %s44_s8 }
   0x9   :  { %s957_s10 = smov 8  }
   0xa   :  { %50 = dma.hbm_to_vmem [thread:$0]  %s43_s7, 2048, %s45_s8, [#allocation5], %s956_s9, %s956_s9, %s957_s10  }
   0xb   :  { %947 = dma.done.wait [#allocation3], 896  }
   0xc   :  { %948 = vsyncadd [#allocation3], 4294966400 }
   0xd   :  { %949 = dma.done.wait [#allocation5], 8320  }
   0xe   :  { %950 = vsyncadd [#allocation5], 4294958976  ;;  %v824_v0 = vld [vmem:[#allocation4 + $0x38] sm:$0xff]  ;;  %v823_v3 = vld [vmem:[#allocation4 + $0x30] sm:$0xff]  ;;  %vm476_vm0 = vcmask 130048   ;;  %vm612_vm1 = vcmask 23552  }
   0xf   :  { %v832_v1 = vld [vmem:[#allocation4 + $0x78] sm:$0xff]  ;;  %480 = vmatpush.bf16.msra.mxu0 %v824_v0  ;;  %v831_v4 = vld [vmem:[#allocation4 + $0x70] sm:$0xff]  ;;  %v822_v8 = vld [vmem:[#allocation4 + $0x28] sm:$0xff] }
  0x10   :  { %v840_v2 = vld [vmem:[#allocation4 + $0xb8] sm:$0xff]  ;;  %493 = vmatpush.bf16.msra.mxu1 %v832_v1  ;;  %v839_v5 = vld [vmem:[#allocation4 + $0xb0] sm:$0xff]  ;;  %v830_v9 = vld [vmem:[#allocation4 + $0x68] sm:$0xff] }
  0x11   :  { %506 = vmatpush.bf16.msra.mxu2 %v840_v2  ;;  %v848_v6 = vld [vmem:[#allocation4 + $0xf8] sm:$0xff]  ;;  %v847_v7 = vld [vmem:[#allocation4 + $0xf0] sm:$0xff]  ;;  %v838_v10 = vld [vmem:[#allocation4 + $0xa8] sm:$0xff] }
  0x12   :  { %519 = vmatpush.bf16.msra.mxu3 %v848_v6  ;;  %v846_v11 = vld [vmem:[#allocation4 + $0xe8] sm:$0xff]  ;;  %v821_v12 = vld [vmem:[#allocation4 + $0x20] sm:$0xff]  ;;  %v820_v16 = vld [vmem:[#allocation4 + $0x18] sm:$0xff] }
  0x13   :  { %481 = vmatpush.bf16.msra.mxu0 %v823_v3  ;;  %v829_v13 = vld [vmem:[#allocation4 + $0x60] sm:$0xff]  ;;  %v828_v17 = vld [vmem:[#allocation4 + $0x58] sm:$0xff]  ;;  %v819_v20 = vld [vmem:[#allocation4 + $0x10] sm:$0xff] }
  0x14   :  { %494 = vmatpush.bf16.msra.mxu1 %v831_v4  ;;  %v837_v14 = vld [vmem:[#allocation4 + $0xa0] sm:$0xff]  ;;  %v836_v18 = vld [vmem:[#allocation4 + $0x98] sm:$0xff]  ;;  %v827_v21 = vld [vmem:[#allocation4 + $0x50] sm:$0xff] }
  0x15   :  { %507 = vmatpush.bf16.msra.mxu2 %v839_v5  ;;  %v845_v15 = vld [vmem:[#allocation4 + $0xe0] sm:$0xff]  ;;  %v844_v19 = vld [vmem:[#allocation4 + $0xd8] sm:$0xff]  ;;  %v835_v22 = vld [vmem:[#allocation4 + $0x90] sm:$0xff] }
  0x16   :  { %520 = vmatpush.bf16.msra.mxu3 %v847_v7  ;;  %v843_v23 = vld [vmem:[#allocation4 + $0xd0] sm:$0xff]  ;;  %v818_v24 = vld [vmem:[#allocation4 + $0x8] sm:$0xff]  ;;  %v817_v27 = vld [vmem:[#allocation4] sm:$0xff] }
  0x17   :  { %482 = vmatpush.bf16.msra.mxu0 %v822_v8  ;;  %v826_v25 = vld [vmem:[#allocation4 + $0x48] sm:$0xff]  ;;  %v825_v29 = vld [vmem:[#allocation4 + $0x40] sm:$0xff]  ;;  %v67_v31 = vld [vmem:[#allocation2 + $0x8] sm:$0xff] }
  0x18   :  { %495 = vmatpush.bf16.msra.mxu1 %v830_v9  ;;  %v834_v26 = vld [vmem:[#allocation4 + $0x88] sm:$0xff]  ;;  %v856_v32 = vld [vmem:[#allocation4 + $0x138] sm:$0xff]  ;;  %v833_v34 = vld [vmem:[#allocation4 + $0x80] sm:$0xff]  ;;  %v74_v37 = vpack.c.bf16 %v67_v31, %v67_v31 }
  0x19   :  { %508 = vmatpush.bf16.msra.mxu2 %v838_v10  ;;  %v842_v28 = vld [vmem:[#allocation4 + $0xc8] sm:$0xff]  ;;  %v864_v33 = vld [vmem:[#allocation4 + $0x178] sm:$0xff]  ;;  %v841_v38 = vld [vmem:[#allocation4 + $0xc0] sm:$0xff] }
  0x1a   :  { %521 = vmatpush.bf16.msra.mxu3 %v846_v11  ;;  %v66_v30 = vld [vmem:[#allocation2] sm:$0xff]  ;;  %v68_v35 = vld [vmem:[#allocation2 + $0x10] sm:$0xff]  ;;  %v865_v39 = vld [vmem:[#allocation4 + $0x180] sm:$0xff] }
  0x1b   :  { %483 = vmatpush.bf16.msra.mxu0 %v821_v12  ;;  %v73_v36 = vpack.c.bf16 %v66_v30, %v66_v30  ;;  %v69_v40 = vld [vmem:[#allocation2 + $0x18] sm:$0xff]  ;;  %v855_v41 = vld [vmem:[#allocation4 + $0x130] sm:$0xff]  ;;  %v75_v43 = vpack.c.bf16 %v68_v35, %v68_v35  ;;  %v854_v45 = vld [vmem:[#allocation4 + $0x128] sm:$0xff] }
  0x1c   :  { %496 = vmatpush.bf16.msra.mxu1 %v829_v13  ;;  %v863_v42 = vld [vmem:[#allocation4 + $0x170] sm:$0xff]  ;;  %v76_v44 = vpack.c.bf16 %v69_v40, %v69_v40  ;;  %v862_v46 = vld [vmem:[#allocation4 + $0x168] sm:$0xff]  ;;  %v853_v47 = vld [vmem:[#allocation4 + $0x120] sm:$0xff] }
  0x1d   :  { %509 = vmatpush.bf16.msra.mxu2 %v837_v14  ;;  %v861_v48 = vld [vmem:[#allocation4 + $0x160] sm:$0xff]  ;;  %v852_v49 = vld [vmem:[#allocation4 + $0x118] sm:$0xff]  ;;  %v851_v52 = vld [vmem:[#allocation4 + $0x110] sm:$0xff] }
  0x1e   :  { %522 = vmatpush.bf16.msra.mxu3 %v845_v15  ;;  %v860_v50 = vld [vmem:[#allocation4 + $0x158] sm:$0xff]  ;;  %v859_v53 = vld [vmem:[#allocation4 + $0x150] sm:$0xff]  ;;  %v850_v55 = vld [vmem:[#allocation4 + $0x108] sm:$0xff] }
  0x1f   :  { %484 = vmatpush.bf16.msra.mxu0 %v820_v16  ;;  %v72_v51 = vld [vmem:[#allocation2 + $0x30] sm:$0xff]  ;;  %v858_v56 = vld [vmem:[#allocation4 + $0x148] sm:$0xff]  ;;  %v849_v57 = vld [vmem:[#allocation4 + $0x100] sm:$0xff] }
  0x20   :  { %497 = vmatpush.bf16.msra.mxu1 %v828_v17  ;;  %v79_v54 = vpack.c.bf16 %v72_v51, %v72_v51  ;;  %v857_v58 = vld [vmem:[#allocation4 + $0x140] sm:$0xff]  ;;  %v70_v59 = vld [vmem:[#allocation2 + $0x20] sm:$0xff]  ;;  %v71_v60 = vld [vmem:[#allocation2 + $0x28] sm:$0xff] }
  0x21   :  { %510 = vmatpush.bf16.msra.mxu2 %v836_v18  ;;  %v77_v61 = vpack.c.bf16 %v70_v59, %v70_v59  ;;  %v78_v62 = vpack.c.bf16 %v71_v60, %v71_v60  ;;  %v587_v63 = vld [vmem:[#allocation6 + $0x78] sm:$0xff]  ;;  %v586_v0 = vld [vmem:[#allocation6 + $0x70] sm:$0xff]  ;;  %v585_v1 = vld [vmem:[#allocation6 + $0x68] sm:$0xff] }
  0x22   :  { %523 = vmatpush.bf16.msra.mxu3 %v844_v19  ;;  %v584_v2 = vld [vmem:[#allocation6 + $0x60] sm:$0xff]  ;;  %v583_v3 = vld [vmem:[#allocation6 + $0x58] sm:$0xff]  ;;  %v582_v4 = vld [vmem:[#allocation6 + $0x50] sm:$0xff] }
  0x23   :  { %485 = vmatpush.bf16.msra.mxu0 %v819_v20  ;;  %v581_v5 = vld [vmem:[#allocation6 + $0x48] sm:$0xff]  ;;  %v580_v6 = vld [vmem:[#allocation6 + $0x40] sm:$0xff]  ;;  %v579_v7 = vld [vmem:[#allocation6 + $0x38] sm:$0xff] }
  0x24   :  { %498 = vmatpush.bf16.msra.mxu1 %v827_v21  ;;  %v578_v8 = vld [vmem:[#allocation6 + $0x30] sm:$0xff]  ;;  %v577_v9 = vld [vmem:[#allocation6 + $0x28] sm:$0xff]  ;;  %v576_v10 = vld [vmem:[#allocation6 + $0x20] sm:$0xff] }
  0x25   :  { %511 = vmatpush.bf16.msra.mxu2 %v835_v22  ;;  %v575_v11 = vld [vmem:[#allocation6 + $0x18] sm:$0xff]  ;;  %v574_v14 = vld [vmem:[#allocation6 + $0x10] sm:$0xff]  ;;  %v573_v15 = vld [vmem:[#allocation6 + $0x8] sm:$0xff] }
  0x26   :  { %524 = vmatpush.bf16.msra.mxu3 %v843_v23  ;;  %v572_v16 = vld [vmem:[#allocation6] sm:$0xff] }
  0x27   :  { %486 = vmatpush.bf16.msra.mxu0 %v818_v24  ;;  %v873_v21 = vld [vmem:[%s1008_s2] ss:$0 sm:$0xff] }
  0x28   :  { %499 = vmatpush.bf16.msra.mxu1 %v826_v25 }
  0x29   :  { %512 = vmatpush.bf16.msra.mxu2 %v834_v26 }
  0x2a   :  { %525 = vmatpush.bf16.msra.mxu3 %v842_v28 }
  0x2b   :  { %487 = vmatpush.bf16.msra.mxu0 %v817_v27 }
  0x2c   :  { %500 = vmatpush.bf16.msra.mxu1 %v825_v29 }
  0x2d   :  { %513 = vmatpush.bf16.msra.mxu2 %v833_v34 }
  0x2e   :  { %488 = vmatmul.bf16.vlgmr.msra.gmra.mxu0 %v73_v36  ;;  %526 = vmatpush.bf16.msra.mxu3 %v841_v38  ;;  %v874_v38 = vld [vmem:[%s1010_s4] ss:$0 sm:$0xff] }
  0x2f   :  { %532 = vmatpush.bf16.msrb.mxu0 %v856_v32  ;;  %501 = vmatmul.bf16.vlgmr.msra.gmra.mxu1 %v74_v37 }
  0x30   :  { %545 = vmatpush.bf16.msrb.mxu1 %v864_v33  ;;  %514 = vmatmul.bf16.vlgmr.msra.gmra.mxu2 %v75_v43 }
  0x31   :  { %565 = vmatpush.bf16.msrb.mxu2 %v865_v39  ;;  %527 = vmatmul.bf16.vlgmr.msra.gmra.mxu3 %v76_v44 }
  0x32   :  { %592 = vmatpush.msrb.mxu3 %v587_v63 }
  0x33   :  { %533 = vmatpush.bf16.msrb.mxu0 %v855_v41 }
  0x34   :  { %546 = vmatpush.bf16.msrb.mxu1 %v863_v42  ;;  %593 = vmatpush.msrb.mxu3 %v586_v0 }
  0x36   :  { %594 = vmatpush.msrb.mxu3 %v585_v1 }
  0x37   :  { %534 = vmatpush.bf16.msrb.mxu0 %v854_v45 }
  0x38   :  { %547 = vmatpush.bf16.msrb.mxu1 %v862_v46  ;;  %595 = vmatpush.msrb.mxu3 %v584_v2 }
  0x3a   :  { %596 = vmatpush.msrb.mxu3 %v583_v3 }
  0x3b   :  { %535 = vmatpush.bf16.msrb.mxu0 %v853_v47 }
  0x3c   :  { %548 = vmatpush.bf16.msrb.mxu1 %v861_v48  ;;  %597 = vmatpush.msrb.mxu3 %v582_v4 }
  0x3e   :  { %598 = vmatpush.msrb.mxu3 %v581_v5 }
  0x3f   :  { %536 = vmatpush.bf16.msrb.mxu0 %v852_v49 }
  0x40   :  { %549 = vmatpush.bf16.msrb.mxu1 %v860_v50  ;;  %816 = vmatmul.msk.bf16.vlgmr.msrb.gmra.mxu2 %vm476_vm0, %v79_v54 }
  0x41   :  { %599 = vmatpush.msrb.mxu3 %v580_v6 }
  0x43   :  { %537 = vmatpush.bf16.msrb.mxu0 %v851_v52  ;;  %600 = vmatpush.msrb.mxu3 %v579_v7 }
  0x44   :  { %550 = vmatpush.bf16.msrb.mxu1 %v859_v53 }
  0x45   :  { %601 = vmatpush.msrb.mxu3 %v578_v8 }
  0x47   :  { %538 = vmatpush.bf16.msrb.mxu0 %v850_v55  ;;  %602 = vmatpush.msrb.mxu3 %v577_v9 }
  0x48   :  { %551 = vmatpush.bf16.msrb.mxu1 %v858_v56 }
  0x49   :  { %603 = vmatpush.msrb.mxu3 %v576_v10 }
  0x4b   :  { %539 = vmatpush.bf16.msrb.mxu0 %v849_v57  ;;  %604 = vmatpush.msrb.mxu3 %v575_v11 }
  0x4c   :  { %552 = vmatpush.bf16.msrb.mxu1 %v857_v58 }
  0x4d   :  { %605 = vmatpush.msrb.mxu3 %v574_v14 }
  0x4e   :  { %540 = vmatmul.bf16.vlgmr.msrb.gmra.mxu0 %v77_v61 }
  0x4f   :  { %553 = vmatmul.bf16.vlgmr.msrb.gmra.mxu1 %v78_v62  ;;  %606 = vmatpush.msrb.mxu3 %v573_v15 }
  0x51   :  { %607 = vmatpush.msrb.mxu3 %v572_v16 }
  0xab   :  { %v489_v12 = vpop.f32.mrf.mxu0 }
  0xac   :  { %v502_v13 = vpop.f32.mrf.mxu1  ;;  %v490_v22 = vadd.f32 %v873_v21, %v489_v12 }
  0xae   :  { %v503_v25 = vadd.f32 %v502_v13, %v490_v22 }
  0xb3   :  { %v491_v17 = vpop.f32.mrf.mxu0  ;;  %v515_v19 = vpop.f32.mrf.mxu2 }
  0xb4   :  { %v504_v18 = vpop.f32.mrf.mxu1  ;;  %v528_v20 = vpop.f32.mrf.mxu3  ;;  %v516_v26 = vadd.f32 %v515_v19, %v503_v25 }
  0xb6   :  { %v529_v28 = vadd.f32 %v528_v20, %v516_v26 }
  0xbb   :  { %v517_v23 = vpop.f32.mrf.mxu2 }
  0xbc   :  { %v530_v24 = vpop.f32.mrf.mxu3 }
  0xc3   :  { %v567_v27 = vpop.f32.mrf.mxu2 }
  0xcb   :  { %v541_v29 = vpop.f32.mrf.mxu0  ;;  %v569_v33 = vpop.f32.mrf.mxu2 }
  0xcc   :  { %v554_v30 = vpop.f32.mrf.mxu1  ;;  %v542_v31 = vadd.f32 %v541_v29, %v529_v28 }
  0xce   :  { %v555_v32 = vadd.f32 %v554_v30, %v542_v31 }
  0xd0   :  { %v568_v34 = vadd.f32 %v567_v27, %v555_v32 }
  0xd2   :  { %v571_v35 = vmax.f32 %v568_v34, 0.0 }
  0xd3   :  { %v543_v36 = vpop.f32.mrf.mxu0 }
  0xd4   :  { %v556_v37 = vpop.f32.mrf.mxu1  ;;  %608 = vmatmul.f32.vlgmr.msrb.gmra.mxu3 %v571_v35 }
 0x157   :  { %v609_v39 = vpop.f32.mrf.mxu3 }
 0x158   :  { %v610_v40 = vadd.f32 %v874_v38, %v609_v39 }
 0x15a   :  { %613 = vst.msk [vmem:[%s1011_s5] sm:$0xff] %vm612_vm1, %v610_v40 }
 0x15b   :  { %618 = vsyncpa [#allocation3], 1 }
 0x15c   :  { %619 = vsyncpa [#allocation5], 1 }

</bundles_post_ra>
